<compile_context>
chip_gen: v5e
topology: v5e:2x2
jax: 0.10.0
libtpu: 0.0.40
codegen_flags: <defaults>
</compile_context>

<pallas_src>
import jax
import jax.numpy as jnp
from jax.experimental import pallas as pl
from jax.experimental.pallas import tpu as pltpu


def _add_pos_kernel(x_ref, pos_ref, o_ref):
    # x_ref:   (TB, TN) tile of the flattened input
    # pos_ref: (1,  TN) shared positional-embedding tile (broadcast over batch)
    # o_ref:   (TB, TN) output tile
    o_ref[...] = (x_ref[...] + pos_ref[...]).astype(o_ref.dtype)


def _pick_lane_tile(flat_len: int, rows_per_tile: int, dtype_bytes: int,
                    tile_bytes: int) -> int:
    """Largest multiple-of-128 divisor of flat_len keeping an x tile <= tile_bytes."""
    if flat_len % 128 != 0:
        # Full-extent last dim is always a legal block shape (correctness fallback).
        return flat_len
    target_elems = max(128, (tile_bytes // dtype_bytes) // max(rows_per_tile, 1))
    tn = min(flat_len, (target_elems // 128) * 128)
    tn = max(tn, 128)
    while tn >= 128:
        if flat_len % tn == 0:
            return tn
        tn -= 128
    return flat_len


def other_positional_encoding(x: jax.Array, pos_emb: jax.Array,
                              tile_bytes: int = 2 * 1024 * 1024) -> jax.Array:
    """x: [B, S, E]; pos_emb: [1, max_len, E]; returns x + pos_emb[:, :S, :]."""
    B, S, E = x.shape
    assert pos_emb.shape[0] == 1 and pos_emb.shape[2] == E
    assert S <= pos_emb.shape[1]

    # Lane-dense layout: fold (S, E) into one trailing axis. The x reshape is
    # free (contiguous); the pos slice+reshape only touches the small table.
    F = S * E
    xf = x.reshape(B, F)
    posf = pos_emb[:, :S, :].reshape(1, F)

    # Batch-row tile: multiple of 8 when possible, else the full batch extent
    # (both satisfy the (8,128) second-to-last-dim rule).
    TB = 8 if (B % 8 == 0) else B
    TN = _pick_lane_tile(F, TB, x.dtype.itemsize, tile_bytes)

    # Batch innermost => pos block index (0, s) is constant across consecutive
    # steps, so the shared pos tile is fetched once per flat tile, not B times.
    grid = (F // TN, B // TB)

    out_flat = pl.pallas_call(
        _add_pos_kernel,
        out_shape=jax.ShapeDtypeStruct((B, F), x.dtype),
        grid_spec=pltpu.PrefetchScalarGridSpec(
            num_scalar_prefetch=0,
            grid=grid,
            in_specs=[
                pl.BlockSpec((TB, TN), lambda s, b: (b, s)),   # x
                pl.BlockSpec((1, TN), lambda s, b: (0, s)),    # pos (shared)
            ],
            out_specs=pl.BlockSpec((TB, TN), lambda s, b: (b, s)),
        ),
        compiler_params=pltpu.CompilerParams(
            dimension_semantics=("parallel", "parallel"),
        ),
    )(xf, posf)
    return out_flat.reshape(B, S, E)


def _check(B, S, E, MAX_LEN, tile_bytes, seed):
    key = jax.random.PRNGKey(seed)
    k_x, k_pos = jax.random.split(key)
    x = jax.random.normal(k_x, (B, S, E), dtype=jnp.float32)
    # Deterministic stand-in for nn.Parameter(randn(...).normal_(std=0.02))
    pos_emb = 0.02 * jax.random.normal(k_pos, (1, MAX_LEN, E), dtype=jnp.float32)

    out = other_positional_encoding(x, pos_emb, tile_bytes=tile_bytes)
    out = jax.block_until_ready(out)

    ref = x + pos_emb[:, :S, :]
    assert out.shape == (B, S, E)
    assert jnp.allclose(out, ref, atol=1e-6), f"mismatch vs reference ({B},{S},{E})"


if __name__ == "__main__":
    # Primary small test consistent with the module: batch=2, seq=8, emb_dim=32.
    _check(B=2, S=8, E=32, MAX_LEN=16, tile_bytes=2 * 1024 * 1024, seed=0)
    # Multi-tile grid along the flattened axis (pos-tile reuse across batch).
    _check(B=4, S=16, E=64, MAX_LEN=32, tile_bytes=2048, seed=1)
    # Batch tiling path (B % 8 == 0) plus flat-axis tiling.
    _check(B=16, S=8, E=32, MAX_LEN=16, tile_bytes=4096, seed=2)
    # Non-128-divisible flattened length -> full-extent fallback block.
    _check(B=2, S=3, E=30, MAX_LEN=8, tile_bytes=2 * 1024 * 1024, seed=3)

    print("KERNEL_OK")
</pallas_src>

<mosaic_0001>
module attributes {stable_mosaic.version = 11 : i64} {
  func.func @_add_pos_kernel(%arg0: i32, %arg1: i32, %arg2: memref<2x256xf32, #tpu.memory_space<vmem>>, %arg3: memref<1x256xf32, #tpu.memory_space<vmem>>, %arg4: memref<2x256xf32, #tpu.memory_space<vmem>>) attributes {dimension_semantics = [#tpu.dimension_semantics<parallel>, #tpu.dimension_semantics<parallel>], iteration_bounds = array<i64: 1, 1>, scalar_prefetch = 0 : i64, scratch_operands = 0 : i64, tpu.core_type = #tpu.core_type<tc>, window_params = [{transform_indices = @transform_0, window_bounds = array<i64: 2, 256>}, {transform_indices = @transform_1, window_bounds = array<i64: 1, 256>}, {transform_indices = @transform_2, window_bounds = array<i64: 2, 256>}]} {
    %c0 = arith.constant 0 : index
    %c0_0 = arith.constant 0 : index
    %0 = vector.load %arg2[%c0, %c0_0] : memref<2x256xf32, #tpu.memory_space<vmem>>, vector<2x256xf32>
    %c0_1 = arith.constant 0 : index
    %c0_2 = arith.constant 0 : index
    %1 = vector.load %arg3[%c0_1, %c0_2] : memref<1x256xf32, #tpu.memory_space<vmem>>, vector<1x256xf32>
    %2 = vector.broadcast %1 : vector<1x256xf32> to vector<2x256xf32>
    %3 = arith.addf %0, %2 : vector<2x256xf32>
    %c0_3 = arith.constant 0 : index
    %c0_4 = arith.constant 0 : index
    %4 = vector.load %arg4[%c0_3, %c0_4] : memref<2x256xf32, #tpu.memory_space<vmem>>, vector<2x256xf32>
    tpu.vector_store %arg4[%c0_3, %c0_4], %3 {strides = array<i32>} : memref<2x256xf32, #tpu.memory_space<vmem>>, vector<2x256xf32>,
    return
  }
  func.func @transform_0(%arg0: i32, %arg1: i32) -> (i32, i32) {
    %c0_i32 = arith.constant 0 : i32
    return %arg1, %arg0 : i32, i32
  }
  func.func @transform_1(%arg0: i32, %arg1: i32) -> (i32, i32) {
    %c0_i32 = arith.constant 0 : i32
    %c0_i32_0 = arith.constant 0 : i32
    return %c0_i32, %arg0 : i32, i32
  }
  func.func @transform_2(%arg0: i32, %arg1: i32) -> (i32, i32) {
    %c0_i32 = arith.constant 0 : i32
    return %arg1, %arg0 : i32, i32
  }
}

</mosaic_0001>

<bundles_post_ra>
// kernel: tpu_custom_call.1
= control target key start
LH: loop header
LB: loop body
LE: loop exit
PB: predicated region body
PF: predicated region fallthrough
CT: control target
= control target key end

     0   :  { %7 = vsyncpa [#allocation3], 0  ;;  %s177_s0 = inlined_call_operand.hbm [shape: f32[2,256], index: 0, kind: input, shape index: {}]   ;;  %s178_s1 = inlined_call_operand.hbm [shape: f32[1,256], index: 1, kind: input, shape index: {}]   ;;  %s179_s2 = inlined_call_operand.hbm [shape: f32[2,256], index: 2, kind: output, shape index: {}]  }
   0x1   :  { %8 = vsyncpa [#allocation6], 0 }
   0x2   :  { %9 = vsyncpa [#allocation4], 0  ;;  %s15_s11 = sshll.u32 %s177_s0, 4  ;;  %s150_s12 = smov [#allocation2]   ;;  %s16_s11 = int_to_ptr.hbm [resolvable:$true] %s15_s11 }
   0x3   :  { %s17_s13 = sshll.u32 %s150_s12, 4  ;;  %s26_s16 = sshll.u32 %s178_s1, 4  ;;  %s18_s13 = int_to_ptr.vmem [resolvable:$true] %s17_s13  ;;  %s27_s16 = int_to_ptr.hbm [resolvable:$true] %s26_s16 }
   0x4   :  { %20 = dma.hbm_to_vmem [thread:$0]  %s16_s11, 64, %s18_s13, [#allocation3]  }
   0x5   :  { %s151_s17 = smov [#allocation5]  }
   0x6   :  { %s28_s18 = sshll.u32 %s151_s17, 4  ;;  %s29_s18 = int_to_ptr.vmem [resolvable:$true] %s28_s18 }
   0x7   :  { %31 = dma.hbm_to_vmem [thread:$0]  %s27_s16, 32, %s29_s18, [#allocation6]  }
   0x8   :  { %144 = dma.done.wait [#allocation3], 64  }
   0x9   :  { %145 = vsyncadd [#allocation3], 4294967232 }
   0xa   :  { %146 = dma.done.wait [#allocation6], 32  }
   0xb   :  { %147 = vsyncadd [#allocation6], 4294967264  ;;  %v41_v0 = vld [vmem:[#allocation5] sm:$0x3]  ;;  %vm46_vm0 = vcmask 1041408   ;;  %s152_s0 = smov [#allocation7]  }
   0xc   :  { %v43_v1 = vperm.slane %v41_v0, 0  ;;  %v44_v2 = vperm.slane %v41_v0, 1  ;;  %v40_v3 = vld [vmem:[#allocation2] sm:$0xf]  ;;  %s56_s19 = sshll.u32 %s152_s0, 4  ;;  %s58_s21 = sshll.u32 %s179_s2, 4  ;;  %s57_s19 = int_to_ptr.vmem [resolvable:$true] %s56_s19  ;;  %s59_s21 = int_to_ptr.hbm [resolvable:$true] %s58_s21 }
   0xe   :  { %v45_v4 = vrot.slane %v44_v2, 6 }
  0x10   :  { %v47_v5 = vsel %vm46_vm0, %v43_v1, %v45_v4 }
  0x11   :  { %v49_v6 = vadd.f32 %v47_v5, %v40_v3 }
  0x13   :  { %50 = vst [vmem:[#allocation7] sm:$0xf] %v49_v6 }
  0x14   :  { %61 = dma.vmem_to_hbm [thread:$0]  %s57_s19, 64, %s59_s21, [#allocation4]  }
  0x15   :  { %148 = dma.done.wait [#allocation4], 64  }
  0x16   :  { %149 = vsyncadd [#allocation4], 4294967232 }
  0x17   :  { %66 = vsyncpa [#allocation3], 1 }
  0x18   :  { %67 = vsyncpa [#allocation6], 1 }
  0x19   :  { %68 = vsyncpa [#allocation4], 1 }

</bundles_post_ra>
